<compile_context>
chip_gen: v5e
topology: v5e:2x2
jax: 0.10.0
libtpu: 0.0.40
codegen_flags: <defaults>
</compile_context>

<pallas_src>
import jax
import jax.numpy as jnp
from jax.experimental import pallas as pl
from jax.experimental.pallas import tpu as pltpu


_LANES = 128
_BLOCK_ROWS = 2048  # 2048 x 128 f32 = 1 MiB/block; in+out double-buffered ~4 MiB VMEM


def _mish_kernel(x_ref, o_ref):
    x = x_ref[...].astype(jnp.float32)
    # Mish: y = x * tanh(softplus(x)).
    # tanh(log1p(e)) == e*(e+2) / (e*(e+2) + 2) exactly; clamp the exp arg at 20
    # (matches PyTorch softplus threshold=20; for x > 20 both forms give 1.0 in
    # f32).  One EUP op (exp) per element instead of exp + log1p + tanh.
    e = jnp.exp(jnp.minimum(x, 20.0))
    num = e * (e + 2.0)
    y = x * (num / (num + 2.0))
    o_ref[...] = y.astype(o_ref.dtype)


def _round_up(v: int, m: int) -> int:
    return (v + m - 1) // m * m


def mish_me(x: jax.Array) -> jax.Array:
    """Elementwise Mish (MishMe forward); same shape/dtype as input."""
    orig_shape = x.shape
    orig_dtype = x.dtype

    flat = x.reshape(-1)
    n = flat.shape[0]

    # Pad only if needed to reach a lane multiple (the common conv-activation
    # case n % 128 == 0 skips pad and slice entirely — no extra HBM traffic).
    n_pad = _round_up(n, _LANES)
    padded = n_pad != n
    if padded:
        flat = jnp.pad(flat, (0, n_pad - n))

    rows = n_pad // _LANES

    # Sublane multiple depends on dtype packing (f32: 8, bf16: 16, int8/fp8: 32).
    itemsize = jnp.dtype(orig_dtype).itemsize
    sublane_mult = {4: 8, 2: 16, 1: 32}.get(itemsize, 8)
    block_rows = min(_BLOCK_ROWS, _round_up(rows, sublane_mult))

    x2d = flat.reshape(rows, _LANES)
    grid = (pl.cdiv(rows, block_rows),)  # partial last block is masked by Pallas

    out2d = pl.pallas_call(
        _mish_kernel,
        out_shape=jax.ShapeDtypeStruct((rows, _LANES), orig_dtype),
        grid_spec=pltpu.PrefetchScalarGridSpec(
            num_scalar_prefetch=0,
            grid=grid,
            in_specs=[pl.BlockSpec((block_rows, _LANES), lambda i: (i, 0))],
            out_specs=pl.BlockSpec((block_rows, _LANES), lambda i: (i, 0)),
        ),
        compiler_params=pltpu.CompilerParams(
            dimension_semantics=("parallel",)  # megacore sharding on v7x
        ),
    )(x2d)

    out_flat = out2d.reshape(-1)
    if padded:
        out_flat = out_flat[:n]
    return out_flat.reshape(orig_shape)


def _mish_ref(x):
    # pure-JAX reference for correctness check
    xf = x.astype(jnp.float32)
    return (xf * jnp.tanh(jax.nn.softplus(xf))).astype(x.dtype)


if __name__ == "__main__":
    key = jax.random.PRNGKey(0)

    # Primary NCHW test (lane-aligned path: 2*4*16*16 = 2048 elements).
    x = jax.random.normal(key, (2, 4, 16, 16), dtype=jnp.float32) * 3.0
    y = mish_me(x)
    jax.block_until_ready(y)
    y_ref = _mish_ref(x)
    assert y.shape == x.shape and y.dtype == x.dtype
    assert jnp.allclose(y, y_ref, atol=1e-5, rtol=1e-5)

    # Misaligned size (exercises the pad/slice fallback path).
    k2 = jax.random.PRNGKey(1)
    x2 = jax.random.normal(k2, (2, 3, 7, 5), dtype=jnp.float32) * 3.0
    y2 = mish_me(x2)
    jax.block_until_ready(y2)
    assert jnp.allclose(y2, _mish_ref(x2), atol=1e-5, rtol=1e-5)

    # bf16 I/O (narrow dtype path; sublane multiple 16).
    x3 = jax.random.normal(k2, (2, 4, 16, 16), dtype=jnp.bfloat16)
    y3 = mish_me(x3)
    jax.block_until_ready(y3)
    assert y3.dtype == jnp.bfloat16
    assert jnp.allclose(y3.astype(jnp.float32), _mish_ref(x3).astype(jnp.float32),
                        atol=1e-2, rtol=1e-2)

    print("KERNEL_OK")
</pallas_src>

<mosaic_0001>
module attributes {stable_mosaic.version = 11 : i64} {
  func.func @_mish_kernel(%arg0: i32, %arg1: memref<16x128xf32, #tpu.memory_space<vmem>>, %arg2: memref<16x128xf32, #tpu.memory_space<vmem>>) attributes {dimension_semantics = [#tpu.dimension_semantics<parallel>], iteration_bounds = array<i64: 1>, scalar_prefetch = 0 : i64, scratch_operands = 0 : i64, tpu.core_type = #tpu.core_type<tc>, window_params = [{transform_indices = @transform_0, window_bounds = array<i64: 16, 128>}, {transform_indices = @transform_1, window_bounds = array<i64: 16, 128>}]} {
    %c0 = arith.constant 0 : index
    %c0_0 = arith.constant 0 : index
    %0 = vector.load %arg1[%c0, %c0_0] : memref<16x128xf32, #tpu.memory_space<vmem>>, vector<16x128xf32>
    %cst = arith.constant 2.000000e+01 : f32
    %1 = vector.broadcast %cst : f32 to vector<16x128xf32>
    %2 = arith.minimumf %0, %1 : vector<16x128xf32>
    %3 = math.exp %2 : vector<16x128xf32>
    %cst_1 = arith.constant 2.000000e+00 : f32
    %4 = vector.broadcast %cst_1 : f32 to vector<16x128xf32>
    %5 = arith.addf %3, %4 : vector<16x128xf32>
    %6 = arith.mulf %3, %5 : vector<16x128xf32>
    %cst_2 = arith.constant 2.000000e+00 : f32
    %7 = vector.broadcast %cst_2 : f32 to vector<16x128xf32>
    %8 = arith.addf %6, %7 : vector<16x128xf32>
    %9 = arith.divf %6, %8 : vector<16x128xf32>
    %10 = arith.mulf %0, %9 : vector<16x128xf32>
    %c0_3 = arith.constant 0 : index
    %c0_4 = arith.constant 0 : index
    %11 = vector.load %arg2[%c0_3, %c0_4] : memref<16x128xf32, #tpu.memory_space<vmem>>, vector<16x128xf32>
    tpu.vector_store %arg2[%c0_3, %c0_4], %10 {strides = array<i32>} : memref<16x128xf32, #tpu.memory_space<vmem>>, vector<16x128xf32>,
    return
  }
  func.func @transform_0(%arg0: i32) -> (i32, i32) {
    %c0_i32 = arith.constant 0 : i32
    %c0_i32_0 = arith.constant 0 : i32
    return %arg0, %c0_i32 : i32, i32
  }
  func.func @transform_1(%arg0: i32) -> (i32, i32) {
    %c0_i32 = arith.constant 0 : i32
    %c0_i32_0 = arith.constant 0 : i32
    return %arg0, %c0_i32 : i32, i32
  }
}

</mosaic_0001>

<bundles_post_ra>
// kernel: tpu_custom_call.1
= control target key start
LH: loop header
LB: loop body
LE: loop exit
PB: predicated region body
PF: predicated region fallthrough
CT: control target
= control target key end

     0   :  { %6 = vsyncpa [#allocation3], 0  ;;  %s182_s0 = inlined_call_operand.hbm [shape: f32[16,128], index: 0, kind: input, shape index: {}]   ;;  %s183_s1 = inlined_call_operand.hbm [shape: f32[16,128], index: 1, kind: output, shape index: {}]  }
   0x1   :  { %7 = vsyncpa [#allocation4], 0  ;;  %s12_s8 = sshll.u32 %s182_s0, 4  ;;  %s156_s9 = smov [#allocation2]   ;;  %s13_s8 = int_to_ptr.hbm [resolvable:$true] %s12_s8 }
   0x2   :  { %s14_s10 = sshll.u32 %s156_s9, 4  ;;  %s157_s11 = smov 128   ;;  %s15_s10 = int_to_ptr.vmem [resolvable:$true] %s14_s10 }
   0x3   :  { %s158_s12 = smov 8  }
   0x4   :  { %20 = dma.hbm_to_vmem [thread:$0]  %s13_s8, 256, %s15_s10, [#allocation3], %s157_s11, %s157_s11, %s158_s12  }
   0x5   :  { %152 = dma.done.wait [#allocation3], 256  }
   0x6   :  { %153 = vsyncadd [#allocation3], 4294967040  ;;  %v25_v0 = vld [vmem:[#allocation2] sm:$0xff]  ;;  %v26_v1 = vld [vmem:[#allocation2 + $0x8] sm:$0xff]  ;;  %s159_s0 = smov [#allocation5]   ;;  %s79_s16 = sshll.u32 %s183_s1, 4  ;;  %s80_s16 = int_to_ptr.hbm [resolvable:$true] %s79_s16 }
   0x7   :  { %v27_v2 = vmin.f32 %v25_v0, 20.0  ;;  %v28_v3 = vmin.f32 %v26_v1, 20.0  ;;  %s77_s13 = sshll.u32 %s159_s0, 4  ;;  %s78_s13 = int_to_ptr.vmem [resolvable:$true] %s77_s13 }
   0x9   :  { %v29_v4 = vmul.f32 1.442695, %v27_v2  ;;  %v31_v5 = vmul.f32 1.442695, %v28_v3 }
   0xb   :  { %96 = vpow2.f32 %v29_v4 }
   0xc   :  { %98 = vpow2.f32 %v31_v5 }
  0x11   :  { %v97_v6 = vpop.eup %96 }
  0x12   :  { %v99_v7 = vpop.eup %98  ;;  %v33_v8 = vadd.f32 2.0, %v97_v6 }
  0x13   :  { %v34_v9 = vadd.f32 2.0, %v99_v7 }
  0x14   :  { %v35_v10 = vmul.f32 %v97_v6, %v33_v8 }
  0x15   :  { %v36_v11 = vmul.f32 %v99_v7, %v34_v9 }
  0x16   :  { %v37_v12 = vadd.f32 2.0, %v35_v10 }
  0x17   :  { %v38_v13 = vadd.f32 2.0, %v36_v11 }
  0x18   :  { %100 = vrcp.f32 %v37_v12  ;;  %vm44_vm0 = vweird.f32 %v37_v12  ;;  %v50_v17 = vand.u32 2147483648, %v37_v12  ;;  %v48_v20 = vand.u32 2147483647, %v37_v12 }
  0x19   :  { %102 = vrcp.f32 %v38_v13  ;;  %v65_v21 = vand.u32 2147483648, %v38_v13  ;;  %vm59_vm2 = vweird.f32 %v38_v13  ;;  %v63_v23 = vand.u32 2147483647, %v38_v13 }
  0x1a   :  { %v51_v25 = vor.u32 1.1754944e-38, %v50_v17  ;;  %vm49_vm5 = vcmp.eq.f32.partialorder %v48_v20, 8.507059e+37 }
  0x1b   :  { %v66_v28 = vor.u32 1.1754944e-38, %v65_v21  ;;  %vm64_vm7 = vcmp.eq.f32.partialorder %v63_v23, 8.507059e+37 }
  0x1e   :  { %v101_v14 = vpop.eup %100 }
  0x1f   :  { %v103_v15 = vpop.eup %102  ;;  %v40_v16 = vmul.f32 %v101_v14, %v37_v12  ;;  %vm45_vm1 = vweird.f32 %v101_v14 }
  0x20   :  { %v55_v18 = vmul.f32 %v103_v15, %v38_v13  ;;  %vm60_vm3 = vweird.f32 %v103_v15  ;;  %vm46_vm4 = vmor %vm44_vm0, %vm45_vm1 }
  0x21   :  { %v41_v19 = vsub.f32 1.0, %v40_v16  ;;  %vm61_vm6 = vmor %vm59_vm2, %vm60_vm3 }
  0x22   :  { %v56_v22 = vsub.f32 1.0, %v55_v18 }
  0x23   :  { %v42_v24 = vmul.f32 %v101_v14, %v41_v19 }
  0x24   :  { %v57_v26 = vmul.f32 %v103_v15, %v56_v22 }
  0x25   :  { %v43_v27 = vadd.f32 %v101_v14, %v42_v24 }
  0x26   :  { %v58_v29 = vadd.f32 %v103_v15, %v57_v26 }
  0x27   :  { %v47_v30 = vsel %vm46_vm4, %v101_v14, %v43_v27 }
  0x28   :  { %v52_v31 = vsel %vm49_vm5, %v51_v25, %v47_v30  ;;  %v62_v32 = vsel %vm61_vm6, %v103_v15, %v58_v29 }
  0x29   :  { %v53_v33 = vmul.f32 %v52_v31, %v35_v10  ;;  %v67_v34 = vsel %vm64_vm7, %v66_v28, %v62_v32 }
  0x2a   :  { %v68_v35 = vmul.f32 %v67_v34, %v36_v11 }
  0x2b   :  { %v69_v36 = vmul.f32 %v53_v33, %v25_v0 }
  0x2c   :  { %v70_v37 = vmul.f32 %v68_v35, %v26_v1 }
  0x2d   :  { %71 = vst [vmem:[#allocation5] sm:$0xff] %v69_v36 }
  0x2e   :  { %72 = vst [vmem:[#allocation5 + $0x8] sm:$0xff] %v70_v37 }
  0x2f   :  { %85 = dma.vmem_to_hbm [thread:$0]  %s78_s13, 256, %s80_s16, [#allocation4], %s157_s11, %s157_s11, %s158_s12  }
  0x30   :  { %154 = dma.done.wait [#allocation4], 256  }
  0x31   :  { %155 = vsyncadd [#allocation4], 4294967040 }
  0x32   :  { %90 = vsyncpa [#allocation3], 1 }
  0x33   :  { %91 = vsyncpa [#allocation4], 1 }

</bundles_post_ra>
